<compile_context>
chip_gen: v7x
topology: tpu7x:2x2x1
jax: 0.10.0
libtpu: 0.0.40
codegen_flags: <defaults>
</compile_context>

<pallas_src>
import functools

import jax
import jax.numpy as jnp
from jax.experimental import pallas as pl
from jax.experimental.pallas import tpu as pltpu

ALPHA = 1.0          # dice weight
BETA = 1.0           # focal weight
DICE_EPS = 1.0       # smp.utils.losses.DiceLoss default eps
FOCAL_ALPHA = 0.25
FOCAL_EPS = 1e-6

LANES = 128
MAX_TILE_ROWS = 2048   # 2048*128*4B = 1 MiB per f32 input block (4 MiB double-buffered)
ROW_QUANTUM = 32       # keeps block shapes legal for f32/bf16/int8/bool inputs


def _round_up(x, m):
    return ((x + m - 1) // m) * m


def _partials_kernel(pr_ref, gt_ref, out_ref, *, tile_rows, tail_valid):
    """Writes stacked per-tile partial sums:
       out[0]=sum(gt*pr), out[1]=sum(pr), out[2]=sum(gt), out[3]=sum(focal_elem),
       each reduced to an (8, 128) lane-dense slab (sublane-group reduce only)."""
    pr = pr_ref[...].astype(jnp.float32)
    gt = gt_ref[...].astype(jnp.float32)

    groups = tile_rows // 8

    def rowsum(x):
        # (tile_rows, 128) -> (8, 128); leading-axis reduce stays on the VPU
        # (no cross-lane XLU traffic).
        return jnp.sum(x.reshape(groups, 8, LANES), axis=0)

    # ---- Dice partial sums (raw logits). Zero-padded tail elements contribute 0,
    #      so these three never need masking.
    out_ref[0] = rowsum(gt * pr)
    out_ref[1] = rowsum(pr)
    out_ref[2] = rowsum(gt)

    # ---- Focal partial sum.
    p = jax.nn.sigmoid(pr)
    is_pos = gt == 1.0
    pt = jnp.where(is_pos, p, 1.0 - p)
    at = jnp.where(is_pos, FOCAL_ALPHA, 1.0 - FOCAL_ALPHA)
    q = 1.0 - pt
    fo = -at * (q * q) * jnp.log(pt + FOCAL_EPS)   # explicit square, no float pow

    if tail_valid == tile_rows * LANES:
        # No padding anywhere: single unmasked path for every tile.
        out_ref[3] = rowsum(fo)
    else:
        i = pl.program_id(0)
        last = pl.num_programs(0) - 1

        @pl.when(i != last)
        def _full():
            out_ref[3] = rowsum(fo)

        @pl.when(i == last)
        def _tail():
            # Local (per-tile) flat index: int32-safe regardless of total size.
            r = jax.lax.broadcasted_iota(jnp.int32, (tile_rows, LANES), 0)
            c = jax.lax.broadcasted_iota(jnp.int32, (tile_rows, LANES), 1)
            mask = (r * LANES + c) < tail_valid
            out_ref[3] = rowsum(jnp.where(mask, fo, 0.0))


@jax.jit
def dice_focal_loss(inputs, targets):
    """inputs/targets: NCHW arrays (targets are {0,1} masks). Returns scalar loss."""
    pr = inputs.reshape(-1)
    gt = targets.reshape(-1)
    n = pr.shape[0]

    rows_needed = -(-n // LANES)
    tile_rows = min(MAX_TILE_ROWS, _round_up(rows_needed, ROW_QUANTUM))
    tile_elems = tile_rows * LANES
    n_pad = _round_up(n, tile_elems)
    num_tiles = n_pad // tile_elems
    tail_valid = n - (num_tiles - 1) * tile_elems   # valid elements in the last tile

    if n_pad != n:   # static decision; skip the pad copy when already tile-aligned
        pr = jnp.pad(pr, (0, n_pad - n))
        gt = jnp.pad(gt, (0, n_pad - n))
    pr = pr.reshape(n_pad // LANES, LANES)
    gt = gt.reshape(n_pad // LANES, LANES)

    kernel = functools.partial(
        _partials_kernel, tile_rows=tile_rows, tail_valid=tail_valid)

    part_shape = jax.ShapeDtypeStruct((num_tiles, 4, 8, LANES), jnp.float32)
    out_bytes = num_tiles * 4 * 8 * LANES * 4
    cost = pl.CostEstimate(
        flops=16 * n_pad,
        transcendentals=2 * n_pad,
        bytes_accessed=int(pr.size * pr.dtype.itemsize
                           + gt.size * gt.dtype.itemsize + out_bytes),
    )

    partials = pl.pallas_call(
        kernel,
        out_shape=part_shape,
        grid_spec=pltpu.PrefetchScalarGridSpec(
            num_scalar_prefetch=0,
            grid=(num_tiles,),
            in_specs=[
                pl.BlockSpec((tile_rows, LANES), lambda i: (i, 0)),
                pl.BlockSpec((tile_rows, LANES), lambda i: (i, 0)),
            ],
            out_specs=pl.BlockSpec((pl.Squeezed(), 4, 8, LANES),
                                   lambda i: (i, 0, 0, 0)),
        ),
        compiler_params=pltpu.CompilerParams(
            dimension_semantics=("parallel",)),
        cost_estimate=cost,
    )(pr, gt)

    # Tiny final combine in plain JAX (num_tiles x 4 x 8 x 128 partials).
    sums = jnp.sum(partials, axis=(0, 2, 3))   # -> (4,)
    tp, pr_sum, gt_sum, fo_sum = sums[0], sums[1], sums[2], sums[3]

    dice = 1.0 - (2.0 * tp + DICE_EPS) / (gt_sum + pr_sum + DICE_EPS)
    focal = fo_sum / jnp.float32(n)
    return ALPHA * dice + BETA * focal


def _reference(inputs, targets):
    pr = inputs.reshape(-1).astype(jnp.float32)
    gt = targets.reshape(-1).astype(jnp.float32)
    tp = jnp.sum(gt * pr)
    dice = 1.0 - (2.0 * tp + DICE_EPS) / (jnp.sum(gt) + jnp.sum(pr) + DICE_EPS)
    p = jax.nn.sigmoid(pr)
    pt = jnp.where(gt == 1.0, p, 1.0 - p)
    at = jnp.where(gt == 1.0, FOCAL_ALPHA, 1.0 - FOCAL_ALPHA)
    focal = jnp.mean(-at * (1.0 - pt) ** 2.0 * jnp.log(pt + FOCAL_EPS))
    return ALPHA * dice + BETA * focal


if __name__ == "__main__":
    key = jax.random.PRNGKey(0)
    k1, k2 = jax.random.split(key)
    B, C, H, W = 2, 4, 16, 16  # NCHW, as in the PyTorch module
    inputs = jax.random.normal(k1, (B, C, H, W), dtype=jnp.float32)        # logits
    targets = jax.random.bernoulli(k2, 0.3, (B, C, H, W)).astype(jnp.float32)

    loss = jax.block_until_ready(dice_focal_loss(inputs, targets))
    ref = jax.block_until_ready(_reference(inputs, targets))
    assert jnp.allclose(loss, ref, rtol=1e-5, atol=1e-5), (loss, ref)
    print("KERNEL_OK")
</pallas_src>

<mosaic_0001>
module attributes {stable_mosaic.version = 11 : i64} {
  func.func @_partials_kernel(%arg0: i32, %arg1: memref<32x128xf32, #tpu.memory_space<vmem>>, %arg2: memref<32x128xf32, #tpu.memory_space<vmem>>, %arg3: memref<1x4x8x128xf32, #tpu.memory_space<vmem>>) attributes {dimension_semantics = [#tpu.dimension_semantics<parallel>], iteration_bounds = array<i64: 1>, scalar_prefetch = 0 : i64, scratch_operands = 0 : i64, tpu.core_type = #tpu.core_type<tc>, window_params = [{transform_indices = @transform_0, window_bounds = array<i64: 32, 128>}, {transform_indices = @transform_1, window_bounds = array<i64: 32, 128>}, {transform_indices = @transform_2, window_bounds = array<i64: 1, 4, 8, 128>}]} {
    %c0 = arith.constant 0 : index
    %c0_0 = arith.constant 0 : index
    %0 = vector.load %arg1[%c0, %c0_0] : memref<32x128xf32, #tpu.memory_space<vmem>>, vector<32x128xf32>
    %c0_1 = arith.constant 0 : index
    %c0_2 = arith.constant 0 : index
    %1 = vector.load %arg2[%c0_1, %c0_2] : memref<32x128xf32, #tpu.memory_space<vmem>>, vector<32x128xf32>
    %2 = arith.mulf %1, %0 : vector<32x128xf32>
    %3 = vector.shape_cast %2 : vector<32x128xf32> to vector<4x8x128xf32>
    %cst = arith.constant dense<0.000000e+00> : vector<8x128xf32>
    %4 = vector.multi_reduction <add>, %3, %cst [0] : vector<4x8x128xf32> to vector<8x128xf32>
    %c0_3 = arith.constant 0 : index
    %c0_4 = arith.constant 0 : index
    %c0_5 = arith.constant 0 : index
    %c0_6 = arith.constant 0 : index
    %5 = vector.load %arg3[%c0_3, %c0_4, %c0_5, %c0_6] : memref<1x4x8x128xf32, #tpu.memory_space<vmem>>, vector<1x1x8x128xf32>
    %6 = vector.shape_cast %5 : vector<1x1x8x128xf32> to vector<8x128xf32>
    %7 = vector.shape_cast %4 : vector<8x128xf32> to vector<1x1x8x128xf32>
    tpu.vector_store %arg3[%c0_3, %c0_4, %c0_5, %c0_6], %7 {strides = array<i32>} : memref<1x4x8x128xf32, #tpu.memory_space<vmem>>, vector<1x1x8x128xf32>,
    %8 = vector.shape_cast %0 : vector<32x128xf32> to vector<4x8x128xf32>
    %cst_7 = arith.constant dense<0.000000e+00> : vector<8x128xf32>
    %9 = vector.multi_reduction <add>, %8, %cst_7 [0] : vector<4x8x128xf32> to vector<8x128xf32>
    %c0_8 = arith.constant 0 : index
    %c1 = arith.constant 1 : index
    %c0_9 = arith.constant 0 : index
    %c0_10 = arith.constant 0 : index
    %10 = vector.load %arg3[%c0_8, %c1, %c0_9, %c0_10] : memref<1x4x8x128xf32, #tpu.memory_space<vmem>>, vector<1x1x8x128xf32>
    %11 = vector.shape_cast %10 : vector<1x1x8x128xf32> to vector<8x128xf32>
    %12 = vector.shape_cast %9 : vector<8x128xf32> to vector<1x1x8x128xf32>
    tpu.vector_store %arg3[%c0_8, %c1, %c0_9, %c0_10], %12 {strides = array<i32>} : memref<1x4x8x128xf32, #tpu.memory_space<vmem>>, vector<1x1x8x128xf32>,
    %13 = vector.shape_cast %1 : vector<32x128xf32> to vector<4x8x128xf32>
    %cst_11 = arith.constant dense<0.000000e+00> : vector<8x128xf32>
    %14 = vector.multi_reduction <add>, %13, %cst_11 [0] : vector<4x8x128xf32> to vector<8x128xf32>
    %c0_12 = arith.constant 0 : index
    %c2 = arith.constant 2 : index
    %c0_13 = arith.constant 0 : index
    %c0_14 = arith.constant 0 : index
    %15 = vector.load %arg3[%c0_12, %c2, %c0_13, %c0_14] : memref<1x4x8x128xf32, #tpu.memory_space<vmem>>, vector<1x1x8x128xf32>
    %16 = vector.shape_cast %15 : vector<1x1x8x128xf32> to vector<8x128xf32>
    %17 = vector.shape_cast %14 : vector<8x128xf32> to vector<1x1x8x128xf32>
    tpu.vector_store %arg3[%c0_12, %c2, %c0_13, %c0_14], %17 {strides = array<i32>} : memref<1x4x8x128xf32, #tpu.memory_space<vmem>>, vector<1x1x8x128xf32>,
    %18 = arith.negf %0 : vector<32x128xf32>
    %19 = math.exp %18 : vector<32x128xf32>
    %cst_15 = arith.constant 1.000000e+00 : f32
    %20 = vector.broadcast %cst_15 : f32 to vector<32x128xf32>
    %21 = arith.addf %20, %19 : vector<32x128xf32>
    %22 = arith.divf %20, %21 : vector<32x128xf32>
    %cst_16 = arith.constant 1.000000e+00 : f32
    %23 = vector.broadcast %cst_16 : f32 to vector<32x128xf32>
    %24 = arith.cmpf oeq, %1, %23 : vector<32x128xf32>
    %cst_17 = arith.constant 1.000000e+00 : f32
    %25 = vector.broadcast %cst_17 : f32 to vector<32x128xf32>
    %26 = arith.subf %25, %22 : vector<32x128xf32>
    %27 = arith.select %24, %22, %26 : vector<32x128xi1>, vector<32x128xf32>
    %cst_18 = arith.constant 2.500000e-01 : f32
    %cst_19 = arith.constant 7.500000e-01 : f32
    %28 = vector.broadcast %cst_18 : f32 to vector<32x128xf32>
    %29 = vector.broadcast %cst_19 : f32 to vector<32x128xf32>
    %30 = arith.select %24, %28, %29 : vector<32x128xi1>, vector<32x128xf32>
    %cst_20 = arith.constant 1.000000e+00 : f32
    %31 = vector.broadcast %cst_20 : f32 to vector<32x128xf32>
    %32 = arith.subf %31, %27 : vector<32x128xf32>
    %cst_21 = arith.constant 0.000000e+00 : f32
    %33 = vector.broadcast %cst_21 : f32 to vector<32x128xf32>
    %34 = arith.subf %33, %30 : vector<32x128xf32>
    %35 = arith.mulf %32, %32 : vector<32x128xf32>
    %36 = arith.mulf %34, %35 : vector<32x128xf32>
    %cst_22 = arith.constant 9.99999997E-7 : f32
    %37 = vector.broadcast %cst_22 : f32 to vector<32x128xf32>
    %38 = arith.addf %27, %37 : vector<32x128xf32>
    %39 = math.log %38 : vector<32x128xf32>
    %40 = arith.mulf %36, %39 : vector<32x128xf32>
    %c0_i32 = arith.constant 0 : i32
    %41 = arith.cmpi ne, %arg0, %c0_i32 : i32
    %42 = arith.extui %41 : i1 to i32
    %c0_i32_23 = arith.constant 0 : i32
    %43 = arith.cmpi ne, %42, %c0_i32_23 : i32
    scf.if %43 {
      %47 = vector.shape_cast %40 : vector<32x128xf32> to vector<4x8x128xf32>
      %cst_26 = arith.constant dense<0.000000e+00> : vector<8x128xf32>
      %48 = vector.multi_reduction <add>, %47, %cst_26 [0] : vector<4x8x128xf32> to vector<8x128xf32>
      %c0_27 = arith.constant 0 : index
      %c3 = arith.constant 3 : index
      %c0_28 = arith.constant 0 : index
      %c0_29 = arith.constant 0 : index
      %49 = vector.load %arg3[%c0_27, %c3, %c0_28, %c0_29] : memref<1x4x8x128xf32, #tpu.memory_space<vmem>>, vector<1x1x8x128xf32>
      %50 = vector.shape_cast %49 : vector<1x1x8x128xf32> to vector<8x128xf32>
      %51 = vector.shape_cast %48 : vector<8x128xf32> to vector<1x1x8x128xf32>
      tpu.vector_store %arg3[%c0_27, %c3, %c0_28, %c0_29], %51 {strides = array<i32>} : memref<1x4x8x128xf32, #tpu.memory_space<vmem>>, vector<1x1x8x128xf32>,
    } else {
    }
    %c0_i32_24 = arith.constant 0 : i32
    %44 = arith.cmpi eq, %arg0, %c0_i32_24 : i32
    %45 = arith.extui %44 : i1 to i32
    %c0_i32_25 = arith.constant 0 : i32
    %46 = arith.cmpi ne, %45, %c0_i32_25 : i32
    scf.if %46 {
      %47 = tpu.iota {dimensions = array<i32: 0>} : vector<32x128xi32>
      %48 = tpu.iota {dimensions = array<i32: 1>} : vector<32x128xi32>
      %c128_i32 = arith.constant 128 : i32
      %49 = vector.broadcast %c128_i32 : i32 to vector<32x128xi32>
      %50 = arith.muli %47, %49 : vector<32x128xi32>
      %51 = arith.addi %50, %48 : vector<32x128xi32>
      %c2048_i32 = arith.constant 2048 : i32
      %52 = vector.broadcast %c2048_i32 : i32 to vector<32x128xi32>
      %53 = arith.cmpi slt, %51, %52 : vector<32x128xi32>
      %cst_26 = arith.constant 0.000000e+00 : f32
      %54 = vector.broadcast %cst_26 : f32 to vector<32x128xf32>
      %55 = arith.select %53, %40, %54 : vector<32x128xi1>, vector<32x128xf32>
      %56 = vector.shape_cast %55 : vector<32x128xf32> to vector<4x8x128xf32>
      %cst_27 = arith.constant dense<0.000000e+00> : vector<8x128xf32>
      %57 = vector.multi_reduction <add>, %56, %cst_27 [0] : vector<4x8x128xf32> to vector<8x128xf32>
      %c0_28 = arith.constant 0 : index
      %c3 = arith.constant 3 : index
      %c0_29 = arith.constant 0 : index
      %c0_30 = arith.constant 0 : index
      %58 = vector.load %arg3[%c0_28, %c3, %c0_29, %c0_30] : memref<1x4x8x128xf32, #tpu.memory_space<vmem>>, vector<1x1x8x128xf32>
      %59 = vector.shape_cast %58 : vector<1x1x8x128xf32> to vector<8x128xf32>
      %60 = vector.shape_cast %57 : vector<8x128xf32> to vector<1x1x8x128xf32>
      tpu.vector_store %arg3[%c0_28, %c3, %c0_29, %c0_30], %60 {strides = array<i32>} : memref<1x4x8x128xf32, #tpu.memory_space<vmem>>, vector<1x1x8x128xf32>,
    } else {
    }
    return
  }
  func.func @transform_0(%arg0: i32) -> (i32, i32) {
    %c0_i32 = arith.constant 0 : i32
    %c0_i32_0 = arith.constant 0 : i32
    return %arg0, %c0_i32 : i32, i32
  }
  func.func @transform_1(%arg0: i32) -> (i32, i32) {
    %c0_i32 = arith.constant 0 : i32
    %c0_i32_0 = arith.constant 0 : i32
    return %arg0, %c0_i32 : i32, i32
  }
  func.func @transform_2(%arg0: i32) -> (i32, i32, i32, i32) {
    %c0_i32 = arith.constant 0 : i32
    %c0_i32_0 = arith.constant 0 : i32
    %c0_i32_1 = arith.constant 0 : i32
    %c0_i32_2 = arith.constant 0 : i32
    return %arg0, %c0_i32, %c0_i32_0, %c0_i32_1 : i32, i32, i32, i32
  }
}

</mosaic_0001>

<bundles_post_ra>
// kernel: dice_focal_loss.1
= control target key start
LH: loop header
LB: loop body
LE: loop exit
PB: predicated region body
PF: predicated region fallthrough
CT: control target
= control target key end

     0   :  { %v122_v34 = vlaneseq  ;;  %v187_v53 = vmov 0.75   ;;  %s275_s0 = inlined_call_operand.vmem [shape: f32[32,128], index: 0, kind: input, shape index: {}]   ;;  %s276_s1 = inlined_call_operand.vmem [shape: f32[32,128], index: 1, kind: input, shape index: {}]   ;;  %s277_s2 = inlined_call_operand.vmem [shape: f32[1,4,8,128], index: 2, kind: output, shape index: {}]  }
   0x1   :  { %v11_v0 = vld [vmem:[%s275_s0] sm:$0xff]  ;;  %v12_v1 = vld [vmem:[%s275_s0 + $0x8] sm:$0xff]  ;;  %v13_v2 = vld [vmem:[%s275_s0 + $0x10] sm:$0xff] }
   0x2   :  { %v14_v3 = vld [vmem:[%s275_s0 + $0x18] sm:$0xff]  ;;  %v218_v4 = vld [vmem:[%s276_s1] sm:$0xff]  ;;  %v223_v5 = vld [vmem:[%s276_s1 + $0x8] sm:$0xff]  ;;  %v156_v6 = vmul.f32 -1.442695, %v11_v0  ;;  %v27_v7 = vadd.f32 %v12_v1, %v11_v0  ;;  %v123_v45 = vshrl.u32 %v122_v34, 7 }
   0x3   :  { %v228_v8 = vld [vmem:[%s276_s1 + $0x10] sm:$0xff]  ;;  %v19_v9 = vmul.f32 %v218_v4, %v11_v0  ;;  %v20_v10 = vmul.f32 %v223_v5, %v12_v1  ;;  %v157_v11 = vmul.f32 -1.442695, %v12_v1  ;;  %v158_v12 = vmul.f32 -1.442695, %v13_v2  ;;  %v235_v13 = vld [vmem:[%s276_s1 + $0x18] sm:$0xff] }
   0x4   :  { %v21_v14 = vmul.f32 %v228_v8, %v13_v2  ;;  %163 = vpow2.f32 %v156_v6  ;;  %v159_v15 = vmul.f32 -1.442695, %v14_v3  ;;  %v22_v16 = vmul.f32 %v235_v13, %v14_v3 }
   0x5   :  { %v23_v17 = vadd.f32 %v20_v10, %v19_v9  ;;  %165 = vpow2.f32 %v157_v11  ;;  %v28_v18 = vadd.f32 %v27_v7, %v13_v2  ;;  %v32_v20 = vadd.f32 %v223_v5, %v218_v4 }
   0x6   :  { %167 = vpow2.f32 %v158_v12  ;;  %vm61_vm0 = vcmp.eq.f32.partialorder %v218_v4, 1.0  ;;  %vm62_vm1 = vcmp.eq.f32.partialorder %v223_v5, 1.0  ;;  %vm63_vm2 = vcmp.eq.f32.partialorder %v228_v8, 1.0 }
   0x7   :  { %v24_v19 = vadd.f32 %v23_v17, %v21_v14  ;;  %169 = vpow2.f32 %v159_v15  ;;  %v29_v21 = vadd.f32 %v28_v18, %v14_v3  ;;  %v33_v23 = vadd.f32 %v32_v20, %v228_v8 }
   0x8   :  { %vm64_vm3 = vcmp.eq.f32.partialorder %v235_v13, 1.0  ;;  %v124_v52 = vadd.s32 8, %v123_v45  ;;  %v73_v54 = vsel %vm61_vm0, 0.25, %v187_v53  ;;  %v125_v56 = vadd.s32 16, %v123_v45 }
   0x9   :  { %v25_v22 = vadd.f32 %v24_v19, %v22_v16  ;;  %154 = vst [vmem:[%s277_s2 + $0x8] sm:$0xff] %v29_v21  ;;  %v34_v24 = vadd.f32 %v33_v23, %v235_v13  ;;  %v74_v57 = vsel %vm62_vm1, 0.25, %v187_v53  ;;  %v126_v59 = vadd.s32 24, %v123_v45 }
   0xa   :  { %v75_v60 = vsel %vm63_vm2, 0.25, %v187_v53  ;;  %v128_v62 = vand.u32 127, %v122_v34  ;;  %v129_v63 = vmul.u32 128, %v123_v45  ;;  %v76_v0 = vsel %vm64_vm3, 0.25, %v187_v53 }
   0xb   :  { %26 = vst [vmem:[%s277_s2] sm:$0xff] %v25_v22  ;;  %155 = vst [vmem:[%s277_s2 + $0x10] sm:$0xff] %v34_v24  ;;  %v81_v1 = vsub.f32 0.0, %v73_v54  ;;  %v130_v3 = vmul.u32 128, %v124_v52  ;;  %v82_v4 = vsub.f32 0.0, %v74_v57  ;;  %v131_v7 = vmul.u32 128, %v125_v56 }
   0xc   :  { %v83_v5 = vsub.f32 0.0, %v75_v60  ;;  %v132_v10 = vmul.u32 128, %v126_v59  ;;  %v84_v11 = vsub.f32 0.0, %v76_v0  ;;  %v133_v14 = vadd.s32 %v129_v63, %v128_v62 }
   0xd   :  { %v134_v15 = vadd.s32 %v130_v3, %v128_v62  ;;  %v135_v18 = vadd.s32 %v131_v7, %v128_v62 }
   0xe   :  { %v164_v25 = vpop.eup %163  ;;  %v136_v21 = vadd.s32 %v132_v10, %v128_v62  ;;  %vm137_vm4 = vcmp.lt.s32.totalorder %v133_v14, 2048 }
   0xf   :  { %v166_v26 = vpop.eup %165  ;;  %v49_v27 = vadd.f32 1.0, %v164_v25  ;;  %vm138_vm5 = vcmp.lt.s32.totalorder %v134_v15, 2048  ;;  %vm139_vm6 = vcmp.lt.s32.totalorder %v135_v18, 2048 }
  0x10   :  { %v168_v28 = vpop.eup %167  ;;  %v50_v29 = vadd.f32 1.0, %v166_v26  ;;  %vm140_vm7 = vcmp.lt.s32.totalorder %v136_v21, 2048 }
  0x11   :  { %v170_v30 = vpop.eup %169  ;;  %v51_v31 = vadd.f32 1.0, %v168_v28  ;;  %171 = vrcp.f32 %v49_v27 }
  0x12   :  { %v52_v32 = vadd.f32 1.0, %v170_v30  ;;  %173 = vrcp.f32 %v50_v29 }
  0x13   :  { %175 = vrcp.f32 %v51_v31 }
  0x14   :  { %177 = vrcp.f32 %v52_v32 }
  0x1b   :  { %v172_v33 = vpop.eup %171 }
  0x1c   :  { %v174_v35 = vpop.eup %173  ;;  %v65_v36 = vsub.f32 1.0, %v172_v33 }
  0x1d   :  { %v176_v37 = vpop.eup %175  ;;  %v66_v38 = vsub.f32 1.0, %v174_v35 }
  0x1e   :  { %v178_v39 = vpop.eup %177  ;;  %v67_v40 = vsub.f32 1.0, %v176_v37  ;;  %v69_v41 = vsel %vm61_vm0, %v172_v33, %v65_v36 }
  0x1f   :  { %v68_v42 = vsub.f32 1.0, %v178_v39  ;;  %v70_v43 = vsel %vm62_vm1, %v174_v35, %v66_v38  ;;  %v93_v44 = vadd.f32 1e-06, %v69_v41  ;;  %v77_v51 = vsub.f32 1.0, %v69_v41 }
  0x20   :  { %v71_v46 = vsel %vm63_vm2, %v176_v37, %v67_v40  ;;  %v94_v47 = vadd.f32 1e-06, %v70_v43  ;;  %v78_v55 = vsub.f32 1.0, %v70_v43 }
  0x21   :  { %v72_v48 = vsel %vm64_vm3, %v178_v39, %v68_v42  ;;  %v95_v49 = vadd.f32 1e-06, %v71_v46  ;;  %179 = vlog2.f32 %v93_v44  ;;  %v79_v58 = vsub.f32 1.0, %v71_v46 }
  0x22   :  { %v96_v50 = vadd.f32 1e-06, %v72_v48  ;;  %181 = vlog2.f32 %v94_v47  ;;  %v80_v61 = vsub.f32 1.0, %v72_v48  ;;  %v85_v2 = vmul.f32 %v77_v51, %v77_v51 }
  0x23   :  { %183 = vlog2.f32 %v95_v49  ;;  %v86_v6 = vmul.f32 %v78_v55, %v78_v55  ;;  %v87_v9 = vmul.f32 %v79_v58, %v79_v58 }
  0x24   :  { %185 = vlog2.f32 %v96_v50  ;;  %v88_v12 = vmul.f32 %v80_v61, %v80_v61  ;;  %v89_v8 = vmul.f32 %v85_v2, %v81_v1 }
  0x25   :  { %v90_v17 = vmul.f32 %v86_v6, %v82_v4  ;;  %v91_v13 = vmul.f32 %v87_v9, %v83_v5 }
  0x26   :  { %v92_v23 = vmul.f32 %v88_v12, %v84_v11 }
  0x2b   :  { %v180_v16 = vpop.eup %179 }
  0x2c   :  { %v182_v19 = vpop.eup %181  ;;  %v98_v20 = vmul.f32 0.6931472, %v180_v16 }
  0x2d   :  { %v184_v22 = vpop.eup %183  ;;  %v100_v24 = vmul.f32 0.6931472, %v182_v19 }
  0x2e   :  { %v186_v25 = vpop.eup %185  ;;  %v102_v26 = vmul.f32 0.6931472, %v184_v22  ;;  %v105_v27 = vmul.f32 %v98_v20, %v89_v8 }
  0x2f   :  { %v104_v28 = vmul.f32 0.6931472, %v186_v25  ;;  %v106_v29 = vmul.f32 %v100_v24, %v90_v17 }
  0x30   :  { %v107_v30 = vmul.f32 %v102_v26, %v91_v13  ;;  %v141_v31 = vsel %vm137_vm4, %v105_v27, 0.0 }
  0x31   :  { %v108_v32 = vmul.f32 %v104_v28, %v92_v23  ;;  %v142_v33 = vsel %vm138_vm5, %v106_v29, 0.0 }
  0x32   :  { %v143_v34 = vsel %vm139_vm6, %v107_v30, 0.0  ;;  %v145_v35 = vadd.f32 %v142_v33, %v141_v31 }
  0x33   :  { %v144_v36 = vsel %vm140_vm7, %v108_v32, 0.0 }
  0x34   :  { %v146_v37 = vadd.f32 %v145_v35, %v143_v34 }
  0x36   :  { %v147_v38 = vadd.f32 %v146_v37, %v144_v36 }
  0x38   :  { %161 = vst [vmem:[%s277_s2 + $0x18] sm:$0xff] %v147_v38 }

</bundles_post_ra>
